<compile_context>
chip_gen: v7x
topology: tpu7x:2x2x1
jax: 0.10.0
libtpu: 0.0.40
codegen_flags: <defaults>
</compile_context>

<pallas_src>
import math
from functools import partial

import jax
import jax.numpy as jnp
from jax import lax
from jax.experimental import pallas as pl
from jax.experimental.pallas import tpu as pltpu


def _round_up(x, m):
    return ((x + m - 1) // m) * m


def _mood_gather_kernel(ids_ref, table_ref, out_ref, *, num_rows):
    # ids_ref:   (1, TILE)    int32        — lane-dense tile of mood ids
    # table_ref: (R_pad, D)   table dtype  — whole padded table, VMEM-resident
    # out_ref:   (TILE, D)    table dtype  — gathered embeddings for this tile
    #
    # NOTE: the clamp must stay in-kernel — besides matching torch.clamp it
    # also sanitizes garbage ids read from the OOB lanes of a partial block.
    ids = jnp.clip(ids_ref[...], 0, num_rows - 1)            # VPU, (1, TILE)
    r_pad = table_ref.shape[0]
    tile = out_ref.shape[0]
    # Transposed one-hot (R_pad, TILE): sublane iota vs lane-dense ids, so the
    # (1, TILE) ids broadcast along sublanes with no relayout.
    row_iota = lax.broadcasted_iota(jnp.int32, (r_pad, tile), 0)
    onehot_t = (row_iota == ids).astype(table_ref.dtype)
    # Contract over rows (dim 0 of both operands): (R_pad,TILE)^T @ (R_pad,D)
    # -> (TILE, D) on the MXU.  HIGHEST precision keeps f32 table rows exact
    # (the 0/1 one-hot weights are exactly representable in every pass).
    gathered = lax.dot_general(
        onehot_t, table_ref[...],
        dimension_numbers=(((0,), (0,)), ((), ())),
        preferred_element_type=jnp.float32,
        precision=lax.Precision.HIGHEST,
    )
    out_ref[...] = gathered.astype(out_ref.dtype)


def mood_embedding_lookup(mood_ids, table, *, max_tile=2048):
    """Equivalent of MoodEmbedding.forward: table[clamp(mood_ids, 0, rows-1)].

    Resident-table design: assumes a small embedding table (demo ~64 KiB after
    padding rows to 128).  Per-step VMEM budget = resident table + 2x id tile
    + 2x out tile + one-hot intermediate, checked below against the scoped
    limit (32 MiB default; v7x physical VMEM is 64 MiB, half of v5e/v6e).
    # TODO(synk): for large vocabularies switch to row-block streaming of the
    # table instead of a single resident block.
    """
    num_rows, embed_dim = table.shape
    orig_shape = mood_ids.shape
    n = math.prod(orig_shape)

    # Lane-dense ids: one (1, N) int32 row, sliced (1, TILE) per grid step.
    ids_row = mood_ids.reshape(1, n).astype(jnp.int32)

    # Tile selection: a single full-extent block for small N (no (8,128)
    # divisibility needed when the block equals the array), otherwise a
    # 128-aligned tile with Pallas partial-block handling on the ragged tail.
    max_tile = _round_up(max_tile, 128)
    tile = n if n <= max_tile else max_tile
    num_tiles = pl.cdiv(n, tile)

    # Pad table rows to 128: full MXU contraction depth, clean layout.  Padded
    # rows are never selected (ids clamped to num_rows - 1).  Keep the table's
    # native dtype (a bf16 table halves residency and output writeback).
    r_pad = _round_up(num_rows, 128)
    table_pad = (
        jnp.zeros((r_pad, embed_dim), table.dtype).at[:num_rows].set(table)
    )

    # Crude VMEM budget check (mainly for v7x's tighter 64 MiB budget).
    itemsize = jnp.dtype(table.dtype).itemsize
    vmem_est = (
        r_pad * embed_dim * itemsize          # resident table
        + 2 * tile * 4                        # double-buffered id tiles
        + 2 * tile * embed_dim * itemsize     # double-buffered out tiles
        + r_pad * tile * itemsize             # one-hot intermediate
    )
    assert vmem_est < 30 * 1024 * 1024, (
        f"tile/table too large for scoped VMEM: ~{vmem_est} bytes")

    kernel = partial(_mood_gather_kernel, num_rows=num_rows)

    out = pl.pallas_call(
        kernel,
        out_shape=jax.ShapeDtypeStruct((n, embed_dim), table.dtype),
        grid=(num_tiles,),
        in_specs=[
            # lane-dense id tile per grid step
            pl.BlockSpec((1, tile), lambda i: (0, i)),
            # full padded table, constant block index -> stays VMEM-resident
            # (single-buffering it via pipeline_mode would save one tiny copy)
            pl.BlockSpec((r_pad, embed_dim), lambda i: (0, 0)),
        ],
        out_specs=pl.BlockSpec((tile, embed_dim), lambda i: (i, 0)),
        compiler_params=pltpu.CompilerParams(
            dimension_semantics=("parallel",)),
    )(ids_row, table_pad)

    return out.reshape(*orig_shape, embed_dim)


def make_mood_embedding_params(num_moods, embed_dim, key):
    """Xavier-uniform init of the (num_moods + 1, embed_dim) embedding table."""
    num_rows = num_moods + 1
    bound = math.sqrt(6.0 / (num_rows + embed_dim))
    return jax.random.uniform(key, (num_rows, embed_dim), dtype=jnp.float32,
                              minval=-bound, maxval=bound)


if __name__ == "__main__":
    num_moods = 6           # table has num_moods + 1 = 7 rows
    embed_dim = 128         # lane-aligned embedding width
    batch, seq = 2, 8       # mood_ids shape (2, 8)

    key = jax.random.PRNGKey(0)
    k_table, k_ids, k_ids2 = jax.random.split(key, 3)

    table = make_mood_embedding_params(num_moods, embed_dim, k_table)
    # include out-of-range ids (negative and > num_moods) to exercise the clamp
    mood_ids = jax.random.randint(k_ids, (batch, seq), -3, num_moods + 5,
                                  dtype=jnp.int32)

    out = jax.block_until_ready(mood_embedding_lookup(mood_ids, table))
    ref = jnp.take(table, jnp.clip(mood_ids, 0, num_moods), axis=0)
    assert out.shape == (batch, seq, embed_dim)
    assert out.dtype == table.dtype
    assert jnp.allclose(out, ref), "mismatch vs reference embedding lookup"

    # second check: larger, non-tile-aligned id count exercises the multi-tile
    # + partial-last-block path (4 blocks of 256 for 1000 ids).
    big_ids = jax.random.randint(k_ids2, (1000,), -3, num_moods + 5,
                                 dtype=jnp.int32)
    big_out = jax.block_until_ready(
        mood_embedding_lookup(big_ids, table, max_tile=256))
    big_ref = jnp.take(table, jnp.clip(big_ids, 0, num_moods), axis=0)
    assert big_out.shape == (1000, embed_dim)
    assert jnp.allclose(big_out, big_ref), "mismatch on multi-tile path"

    print("KERNEL_OK")
</pallas_src>

<mosaic_0001>
module attributes {stable_mosaic.version = 11 : i64} {
  func.func @_mood_gather_kernel(%arg0: i32, %arg1: memref<1x16xi32, #tpu.memory_space<vmem>>, %arg2: memref<128x128xf32, #tpu.memory_space<vmem>>, %arg3: memref<16x128xf32, #tpu.memory_space<vmem>>) attributes {dimension_semantics = [#tpu.dimension_semantics<parallel>], iteration_bounds = array<i64: 1>, scalar_prefetch = 0 : i64, scratch_operands = 0 : i64, tpu.core_type = #tpu.core_type<tc>, window_params = [{transform_indices = @transform_0, window_bounds = array<i64: 1, 16>}, {pipeline_mode = #tpu.pipeline_mode<synchronous>, transform_indices = @transform_1, window_bounds = array<i64: 128, 128>}, {transform_indices = @transform_2, window_bounds = array<i64: 16, 128>}]} {
    %c0 = arith.constant 0 : index
    %c0_0 = arith.constant 0 : index
    %0 = vector.load %arg1[%c0, %c0_0] : memref<1x16xi32, #tpu.memory_space<vmem>>, vector<1x16xi32>
    %c0_i32 = arith.constant 0 : i32
    %c6_i32 = arith.constant 6 : i32
    %1 = vector.broadcast %c0_i32 : i32 to vector<1x16xi32>
    %2 = arith.maxsi %1, %0 : vector<1x16xi32>
    %3 = vector.broadcast %c6_i32 : i32 to vector<1x16xi32>
    %4 = arith.minsi %3, %2 : vector<1x16xi32>
    %5 = tpu.iota {dimensions = array<i32: 0>} : vector<128x16xi32>
    %6 = vector.broadcast %4 : vector<1x16xi32> to vector<128x16xi32>
    %7 = arith.cmpi eq, %5, %6 : vector<128x16xi32>
    %8 = arith.extui %7 : vector<128x16xi1> to vector<128x16xi32>
    %9 = arith.sitofp %8 : vector<128x16xi32> to vector<128x16xf32>
    %c0_1 = arith.constant 0 : index
    %c0_2 = arith.constant 0 : index
    %10 = vector.load %arg2[%c0_1, %c0_2] : memref<128x128xf32, #tpu.memory_space<vmem>>, vector<128x128xf32>
    %cst = arith.constant dense<0.000000e+00> : vector<16x128xf32>
    %11 = tpu.matmul %9, %10, %cst {dimension_numbers = #tpu.dot_dimension_numbers<[0], [0], [1], [1], [0, 1, 1, 1], [], []>, precision = #tpu.contract_precision<fp32>} : vector<128x16xf32>, vector<128x128xf32>, vector<16x128xf32> -> vector<16x128xf32>
    %c0_3 = arith.constant 0 : index
    %c0_4 = arith.constant 0 : index
    %12 = vector.load %arg3[%c0_3, %c0_4] : memref<16x128xf32, #tpu.memory_space<vmem>>, vector<16x128xf32>
    tpu.vector_store %arg3[%c0_3, %c0_4], %11 {strides = array<i32>} : memref<16x128xf32, #tpu.memory_space<vmem>>, vector<16x128xf32>,
    return
  }
  func.func @transform_0(%arg0: i32) -> (i32, i32) {
    %c0_i32 = arith.constant 0 : i32
    %c0_i32_0 = arith.constant 0 : i32
    return %c0_i32, %arg0 : i32, i32
  }
  func.func @transform_1(%arg0: i32) -> (i32, i32) {
    %c0_i32 = arith.constant 0 : i32
    %c0_i32_0 = arith.constant 0 : i32
    %c0_i32_1 = arith.constant 0 : i32
    return %c0_i32, %c0_i32_0 : i32, i32
  }
  func.func @transform_2(%arg0: i32) -> (i32, i32) {
    %c0_i32 = arith.constant 0 : i32
    %c0_i32_0 = arith.constant 0 : i32
    return %arg0, %c0_i32 : i32, i32
  }
}

</mosaic_0001>

<bundles_post_ra>
// kernel: tpu_custom_call.1
= control target key start
LH: loop header
LB: loop body
LE: loop exit
PB: predicated region body
PF: predicated region fallthrough
CT: control target
= control target key end

     0   :  { %7 = vsyncpa [#allocation3], 0  ;;  %s1968_s0 = inlined_call_operand.hbm [shape: s32[1,16], index: 0, kind: input, shape index: {}]   ;;  %s1969_s1 = inlined_call_operand.hbm [shape: f32[128,128], index: 1, kind: input, shape index: {}]   ;;  %s1970_s2 = inlined_call_operand.hbm [shape: f32[16,128], index: 2, kind: output, shape index: {}]  }
   0x1   :  { %8 = vsyncpa [#allocation6], 0 }
   0x2   :  { %9 = vsyncpa [#allocation4], 0  ;;  %s1478_s9 = smov [#allocation2]   ;;  %s1479_s11 = smov [#allocation5]  }
   0x3   :  { %s16_s10 = sshll.u32 %s1478_s9, 4  ;;  %s25_s12 = sshll.u32 %s1479_s11, 4  ;;  %s17_s10 = int_to_ptr.vmem [resolvable:$true] %s16_s10  ;;  %s1499_s12 = int_to_ptr.vmem [resolvable:$true] %s25_s12 }
   0x4   :  { %s1406_s15 = scalar_lea.hbm %s1968_s0, 16 }
   0x5   :  { %p1407_p0 = scmp.ne.s32.totalorder %s1968_s0, %s1406_s15  ;;  %p1410_p1 = scmp.lt.u32.totalorder %s1406_s15, %s1968_s0 }
   0x7   :  { %p1412_p2 = pnand %p1410_p1, %p1407_p0 }
   0x9   :  { %1415 = shalt.err (!%p1412_p2)
}
   0xa   :  { %s1416_s20 = scalar_lea.vmem %s17_s10, 16  ;;  %s1420_s21 = scalar_lea.vmem %s17_s10, 32 }
   0xb   :  { %p1417_p3 = scmp.ne.s32.totalorder %s17_s10, %s1416_s20  ;;  %p1421_p4 = scmp.lt.s32.totalorder %s17_s10, %s17_s10 }
   0xc   :  { %p1422_p5 = scmp.lt.s32.totalorder %s1420_s21, %s1416_s20 }
   0xe   :  { %p1423_p6 = por %p1422_p5, %p1421_p4 }
  0x10   :  { %p1424_p7 = pnand %p1423_p6, %p1417_p3 }
  0x12   :  { %1427 = shalt.err (!%p1424_p7)
}
  0x13   :  { %19 = dma.hbm_to_vmem [thread:$0]  %s1968_s0, 16, %s17_s10, [#allocation3]  }
  0x14   :  { %s1428_s26 = scalar_lea.hbm %s1969_s1, 2048 }
  0x15   :  { %p1429_p8 = scmp.ne.s32.totalorder %s1969_s1, %s1428_s26  ;;  %p1432_p9 = scmp.lt.u32.totalorder %s1428_s26, %s1969_s1 }
  0x17   :  { %p1434_p10 = pnand %p1432_p9, %p1429_p8 }
  0x19   :  { %1437 = shalt.err (!%p1434_p10)
}
  0x1a   :  { %s1438_s3 = scalar_lea.vmem %s1499_s12, 2048  ;;  %p1443_p12 = scmp.lt.s32.totalorder %s1499_s12, %s1499_s12 }
  0x1b   :  { %p1439_p11 = scmp.ne.s32.totalorder %s1499_s12, %s1438_s3  ;;  %p1444_p13 = scmp.lt.s32.totalorder %s1438_s3, %s1438_s3 }
  0x1d   :  { %p1445_p0 = por %p1444_p13, %p1443_p12 }
  0x1f   :  { %p1446_p1 = pnand %p1445_p0, %p1439_p11 }
  0x21   :  { %1449 = shalt.err (!%p1446_p1)
}
  0x22   :  { %s1480_s0 = smov 128   ;;  %s1481_s4 = smov 8  }
  0x23   :  { %31 = dma.hbm_to_vmem [thread:$0]  %s1969_s1, 2048, %s1499_s12, [#allocation6], %s1480_s0, %s1480_s0, %s1481_s4  }
  0x24   :  { %1472 = dma.done.wait [#allocation3], 16  }
  0x25   :  { %1473 = vsyncadd [#allocation3], 4294967280 }
  0x26   :  { %1474 = dma.done.wait [#allocation6], 2048  }
  0x27   :  { %1475 = vsyncadd [#allocation6], 4294965248  ;;  %v43_v0 = vlaneseq  ;;  %v38_v2 = vld [vmem:[#allocation2] sm:$0x1]  ;;  %v1536_v4 = vld [vmem:[#allocation5] sm:$0xff]  ;;  %v1482_v23 = vmov 0.0  }
  0x28   :  { %vm39_vm0 = vcmp.gt.s32.totalorder %v38_v2, 0  ;;  %v1538_v5 = vld [vmem:[#allocation5 + $0x8] sm:$0xff]  ;;  %v1540_v6 = vld [vmem:[#allocation5 + $0x10] sm:$0xff]  ;;  %v161_v8 = vand.u32 4294901760, %v1536_v4  ;;  %v1544_v10 = vld [vmem:[#allocation5 + $0x18] sm:$0xff]  ;;  %s1483_s1 = smov [#allocation7]  }
  0x29   :  { %v1533_v1 = vshrl.u32 %v43_v0, 7  ;;  %v40_v7 = vsel %vm39_vm0, %v38_v2, 0  ;;  %v164_v9 = vand.u32 4294901760, %v1538_v5  ;;  %v167_v11 = vand.u32 4294901760, %v1540_v6  ;;  %v1547_v12 = vld [vmem:[#allocation5 + $0x20] sm:$0xff]  ;;  %v1551_v15 = vld [vmem:[#allocation5 + $0x28] sm:$0xff] }
  0x2a   :  { %vm41_vm1 = vcmp.lt.s32.totalorder %v40_v7, 6  ;;  %v170_v14 = vand.u32 4294901760, %v1544_v10  ;;  %v173_v18 = vand.u32 4294901760, %v1547_v12  ;;  %v176_v19 = vand.u32 4294901760, %v1551_v15  ;;  %v1579_v26 = vld [vmem:[#allocation5 + $0x30] sm:$0xff]  ;;  %v1581_v27 = vld [vmem:[#allocation5 + $0x38] sm:$0xff] }
  0x2b   :  { %v62_v3 = vsub.s32 0, %v1533_v1  ;;  %v45_v13 = vadd.s32 8, %v1533_v1  ;;  %v42_v16 = vsel %vm41_vm1, %v40_v7, 6  ;;  %v1553_v17 = vpack.c.bf16 %v164_v9, %v161_v8  ;;  %v1583_v28 = vld [vmem:[#allocation5 + $0x40] sm:$0xff]  ;;  %v1585_v29 = vld [vmem:[#allocation5 + $0x48] sm:$0xff]  ;;  %v1598_v36 = vld [vmem:[#allocation5 + $0x50] sm:$0xff] }
  0x2c   :  { %v1561_v21 = vpack.c.bf16 %v170_v14, %v167_v11  ;;  %v46_v22 = vadd.s32 16, %v1533_v1  ;;  %v1577_v25 = vpack.c.bf16 %v176_v19, %v173_v18  ;;  %v47_v31 = vadd.s32 24, %v1533_v1  ;;  %v1600_v37 = vld [vmem:[#allocation5 + $0x58] sm:$0xff]  ;;  %v1627_v46 = vld [vmem:[#allocation5 + $0x60] sm:$0xff]  ;;  %v1629_v47 = vld [vmem:[#allocation5 + $0x68] sm:$0xff]  ;;  %s851_s7 = sshll.u32 %s1483_s1, 4  ;;  %s852_s7 = int_to_ptr.vmem [resolvable:$true] %s851_s7 }
  0x2d   :  { %v1557_v20 = vrot.slane %v42_v16, %v62_v3  ;;  %1295 = vmatprep.subr.bf16.mxu0 %v1553_v17  ;;  %1199 = vmatprep.subr.bf16.mxu1 %v1553_v17  ;;  %v179_v32 = vand.u32 4294901760, %v1579_v26  ;;  %v182_v33 = vand.u32 4294901760, %v1581_v27  ;;  %v185_v34 = vand.u32 4294901760, %v1583_v28  ;;  %v1665_v57 = vld [vmem:[#allocation5 + $0x70] sm:$0xff]  ;;  %v1667_v58 = vld [vmem:[#allocation5 + $0x78] sm:$0xff]  ;;  %s1450_s8 = scalar_lea.vmem %s852_s7, 256  ;;  %p1455_p3 = scmp.lt.s32.totalorder %s852_s7, %s852_s7 }
  0x2e   :  { %1297 = vmatpush3.bf16.msra.mxu0 %v1553_v17  ;;  %1201 = vmatpush3.bf16.msra.mxu1 %v1553_v17  ;;  %v188_v35 = vand.u32 4294901760, %v1585_v29  ;;  %v48_v39 = vadd.s32 32, %v1533_v1  ;;  %v49_v40 = vadd.s32 40, %v1533_v1  ;;  %v191_v43 = vand.u32 4294901760, %v1598_v36  ;;  %p1451_p2 = scmp.ne.s32.totalorder %s852_s7, %s1450_s8  ;;  %p1456_p4 = scmp.lt.s32.totalorder %s1450_s8, %s1450_s8 }
  0x2f   :  { %vm64_vm2 = vcmp.eq.s32.totalorder %v1533_v1, %v1557_v20  ;;  %vm65_vm3 = vcmp.eq.s32.totalorder %v45_v13, %v1557_v20  ;;  %1299 = vmatprep.subr.bf16.mxu0 %v1561_v21  ;;  %1203 = vmatprep.subr.bf16.mxu1 %v1561_v21  ;;  %vm66_vm4 = vcmp.eq.s32.totalorder %v46_v22, %v1557_v20  ;;  %v194_v44 = vand.u32 4294901760, %v1600_v37 }
  0x30   :  { %v864_v24 = vsel %vm64_vm2, 1.0, %v1482_v23  ;;  %v865_v30 = vsel %vm65_vm3, 1.0, %v1482_v23  ;;  %v866_v38 = vsel %vm66_vm4, 1.0, %v1482_v23  ;;  %vm67_vm5 = vcmp.eq.s32.totalorder %v47_v31, %v1557_v20  ;;  %p1457_p5 = por %p1456_p4, %p1455_p3 }
  0x31   :  { %128 = vxpose.xlu0.b32.start [1/16] (narrow) %v864_v24, 16  ;;  %v1612_v41 = vpack.c.bf16 %v182_v33, %v179_v32  ;;  %v1619_v42 = vpack.c.bf16 %v188_v35, %v185_v34  ;;  %v1624_v45 = vadd.s32 48, %v1533_v1  ;;  %v1632_v48 = vsub.f32 %v1536_v4, %v161_v8 }
  0x32   :  { %1301 = vmatpush3.bf16.msra.mxu0 %v1561_v21  ;;  %1205 = vmatpush3.bf16.msra.mxu1 %v1561_v21  ;;  %v1635_v49 = vsub.f32 %v1538_v5, %v164_v9  ;;  %v867_v50 = vsel %vm67_vm5, 1.0, %v1482_v23  ;;  %v1642_v51 = vsub.f32 %v1540_v6, %v167_v11  ;;  %vm68_vm6 = vcmp.eq.s32.totalorder %v48_v39, %v1557_v20  ;;  %p1458_p6 = pnand %p1457_p5, %p1451_p2 }
  0x33   :  { %1303 = vmatprep.subr.bf16.mxu0 %v1577_v25  ;;  %1207 = vmatprep.subr.bf16.mxu1 %v1577_v25  ;;  %vm69_vm7 = vcmp.eq.s32.totalorder %v49_v40, %v1557_v20  ;;  %v1647_v52 = vadd.s32 56, %v1533_v1  ;;  %v1653_v53 = vsub.f32 %v1544_v10, %v170_v14  ;;  %v1661_v54 = vpack.c.bf16 %v194_v44, %v191_v43 }
  0x34   :  { %v197_v55 = vand.u32 4294901760, %v1627_v46  ;;  %v200_v56 = vand.u32 4294901760, %v1629_v47  ;;  %v278_v59 = vand.u32 4294901760, %v1642_v51  ;;  %vm70_vm8 = vcmp.eq.s32.totalorder %v1624_v45, %v1557_v20 }
  0x35   :  { %129 = vxpose.xlu0.b32.cont [2/16] (narrow) %v865_v30, 16  ;;  %v264_v60 = vand.u32 4294901760, %v1632_v48  ;;  %v271_v61 = vand.u32 4294901760, %v1635_v49  ;;  %v285_v62 = vand.u32 4294901760, %v1653_v53  ;;  %v868_v63 = vsel %vm68_vm6, 1.0, %v1482_v23 }
  0x36   :  { %1305 = vmatpush3.bf16.msra.mxu0 %v1577_v25  ;;  %1209 = vmatpush3.bf16.msra.mxu1 %v1577_v25  ;;  %v279_v0 = vsub.f32 %v1642_v51, %v278_v59  ;;  %v1683_v2 = vsub.f32 %v1547_v12, %v173_v18  ;;  %v1688_v3 = vsub.f32 %v1551_v15, %v176_v19  ;;  %v203_v4 = vand.u32 4294901760, %v1665_v57 }
  0x37   :  { %1307 = vmatprep.subr.bf16.mxu0 %v1612_v41  ;;  %1211 = vmatprep.subr.bf16.mxu1 %v1612_v41  ;;  %v206_v5 = vand.u32 4294901760, %v1667_v58  ;;  %v1693_v6 = vpack.c.bf16 %v285_v62, %v278_v59  ;;  %v286_v7 = vsub.f32 %v1653_v53, %v285_v62  ;;  %v1702_v8 = vpack.c.bf16 %v200_v56, %v197_v55 }
  0x38   :  { %v280_v9 = vand.u32 4294901760, %v279_v0  ;;  %v292_v10 = vand.u32 4294901760, %v1683_v2  ;;  %v299_v11 = vand.u32 4294901760, %v1688_v3  ;;  %v869_v12 = vsel %vm69_vm7, 1.0, %v1482_v23 }
  0x39   :  { %130 = vxpose.xlu0.b32.cont [3/16] (narrow) %v866_v38, 16  ;;  %v265_v13 = vsub.f32 %v1632_v48, %v264_v60  ;;  %v272_v14 = vsub.f32 %v1635_v49, %v271_v61  ;;  %v287_v15 = vand.u32 4294901760, %v286_v7  ;;  %v1719_v22 = vsub.f32 %v1579_v26, %v179_v32 }
  0x3a   :  { %1309 = vmatpush3.bf16.msra.mxu0 %v1612_v41  ;;  %1213 = vmatpush3.bf16.msra.mxu1 %v1612_v41  ;;  %v1712_v16 = vpack.c.bf16 %v299_v11, %v292_v10  ;;  %v293_v18 = vsub.f32 %v1683_v2, %v292_v10  ;;  %v300_v19 = vsub.f32 %v1688_v3, %v299_v11  ;;  %v52_v24 = vadd.s32 64, %v1533_v1 }
  0x3b   :  { %1311 = vmatprep.subr.bf16.mxu0 %v1619_v42  ;;  %1215 = vmatprep.subr.bf16.mxu1 %v1619_v42  ;;  %vm71_vm9 = vcmp.eq.s32.totalorder %v1647_v52, %v1557_v20  ;;  %v1725_v30 = vpack.c.bf16 %v287_v15, %v280_v9  ;;  %v1730_v31 = vsub.f32 %v1581_v27, %v182_v33  ;;  %v306_v39 = vand.u32 4294901760, %v1719_v22 }
  0x3c   :  { %v1738_v26 = vpack.c.bf16 %v206_v5, %v203_v4  ;;  %v294_v32 = vand.u32 4294901760, %v293_v18  ;;  %v301_v38 = vand.u32 4294901760, %v300_v19  ;;  %v870_v27 = vsel %vm70_vm8, 1.0, %v1482_v23 }
  0x3d   :  { %131 = vxpose.xlu0.b32.cont [4/16] (narrow) %v867_v50, 16  ;;  %v266_v33 = vand.u32 4294901760, %v265_v13  ;;  %v273_v40 = vand.u32 4294901760, %v272_v14  ;;  %v313_v50 = vand.u32 4294901760, %v1730_v31  ;;  %v307_v62 = vsub.f32 %v1719_v22, %v306_v39 }
  0x3e   :  { %1313 = vmatpush3.bf16.msra.mxu0 %v1619_v42  ;;  %1217 = vmatpush3.bf16.msra.mxu1 %v1619_v42  ;;  %v1747_v59 = vpack.c.bf16 %v301_v38, %v294_v32  ;;  %v1758_v45 = vsub.f32 %v1585_v29, %v188_v35  ;;  %v53_v0 = vadd.s32 72, %v1533_v1  ;;  %v1767_v10 = vpack.c.bf16 %v271_v61, %v264_v60 }
  0x3f   :  { %1315 = vmatprep.subr.bf16.mxu0 %v1661_v54  ;;  %1219 = vmatprep.subr.bf16.mxu1 %v1661_v54  ;;  %v1762_v7 = vpack.c.bf16 %v313_v50, %v306_v39  ;;  %v314_v9 = vsub.f32 %v1730_v31, %v313_v50  ;;  %v871_v35 = vsel %vm71_vm9, 1.0, %v1482_v23  ;;  %vm72_vm10 = vcmp.eq.s32.totalorder %v52_v24, %v1557_v20 }
  0x40   :  { %v327_v29 = vand.u32 4294901760, %v1758_v45  ;;  %v1777_v11 = vpack.c.bf16 %v273_v40, %v266_v33  ;;  %v1786_v14 = vsub.f32 %v1598_v36, %v191_v43  ;;  %v1794_v15 = vsub.f32 %v1600_v37, %v194_v44 }
  0x41   :  { %132 = vxpose.xlu0.b32.cont [5/16] (narrow) %v868_v63, 16  ;;  %v1753_v63 = vsub.f32 %v1583_v28, %v185_v34  ;;  %v308_v28 = vand.u32 4294901760, %v307_v62  ;;  %v872_v36 = vsel %vm72_vm10, 1.0, %v1482_v23  ;;  %vm73_vm11 = vcmp.eq.s32.totalorder %v53_v0, %v1557_v20 }
  0x42   :  { %1317 = vmatpush3.bf16.msra.mxu0 %v1661_v54  ;;  %1221 = vmatpush3.bf16.msra.mxu1 %v1661_v54  ;;  %v328_v13 = vsub.f32 %v1758_v45, %v327_v29  ;;  %v334_v32 = vand.u32 4294901760, %v1786_v14  ;;  %v341_v37 = vand.u32 4294901760, %v1794_v15  ;;  %v347_v38 = vsub.f32 %v1627_v46, %v197_v55 }
  0x43   :  { %1319 = vmatprep.subr.bf16.mxu0 %v1702_v8  ;;  %1223 = vmatprep.subr.bf16.mxu1 %v1702_v8  ;;  %v320_v34 = vand.u32 4294901760, %v1753_v63  ;;  %v354_v39 = vsub.f32 %v1629_v47, %v200_v56  ;;  %v54_v24 = vadd.s32 80, %v1533_v1  ;;  %v873_v0 = vsel %vm73_vm11, 1.0, %v1482_v23 }
  0x44   :  { %v329_v19 = vand.u32 4294901760, %v328_v13  ;;  %v335_v44 = vsub.f32 %v1786_v14, %v334_v32  ;;  %v342_v33 = vsub.f32 %v1794_v15, %v341_v37  ;;  %v348_v50 = vand.u32 4294901760, %v347_v38 }
  0x45   :  { %133 = vxpose.xlu0.b32.cont [6/16] (narrow) %v869_v12, 16  ;;  %v315_v12 = vand.u32 4294901760, %v314_v9  ;;  %v1779_v60 = vpack.c.bf16 %v327_v29, %v320_v34  ;;  %v321_v61 = vsub.f32 %v1753_v63, %v320_v34  ;;  %v355_v62 = vand.u32 4294901760, %v354_v39 }
  0x46   :  { %1321 = vmatpush3.bf16.msra.mxu0 %v1702_v8  ;;  %1225 = vmatpush3.bf16.msra.mxu1 %v1702_v8  ;;  %v336_v40 = vand.u32 4294901760, %v335_v44  ;;  %v343_v9 = vand.u32 4294901760, %v342_v33  ;;  %v349_v46 = vsub.f32 %v347_v38, %v348_v50  ;;  %v361_v47 = vsub.f32 %v1665_v57, %v203_v4 }
  0x47   :  { %1323 = vmatprep.subr.bf16.mxu0 %v1738_v26  ;;  %1227 = vmatprep.subr.bf16.mxu1 %v1738_v26  ;;  %v1789_v52 = vpack.c.bf16 %v315_v12, %v308_v28  ;;  %v322_v18 = vand.u32 4294901760, %v321_v61  ;;  %v1819_v28 = vpack.c.bf16 %v355_v62, %v348_v50  ;;  %v356_v55 = vsub.f32 %v354_v39, %v355_v62 }
  0x48   :  { %vm74_vm12 = vcmp.eq.s32.totalorder %v54_v24, %v1557_v20  ;;  %v55_v56 = vadd.s32 88, %v1533_v1  ;;  %v1826_v34 = vpack.c.bf16 %v343_v9, %v336_v40  ;;  %v368_v29 = vsub.f32 %v1667_v58, %v206_v5 }
  0x49   :  { %134 = vxpose.xlu0.b32.cont [7/16] (narrow) %v870_v27, 16  ;;  %v1805_v43 = vpack.c.bf16 %v329_v19, %v322_v18  ;;  %v1815_v27 = vpack.c.bf16 %v341_v37, %v334_v32  ;;  %v357_v12 = vand.u32 4294901760, %v356_v55  ;;  %v362_v61 = vand.u32 4294901760, %v361_v47 }
  0x4a   :  { %1325 = vmatpush3.bf16.msra.mxu0 %v1738_v26  ;;  %1229 = vmatpush3.bf16.msra.mxu1 %v1738_v26  ;;  %v369_v13 = vand.u32 4294901760, %v368_v29  ;;  %v874_v18 = vsel %vm74_vm12, 1.0, %v1482_v23  ;;  %vm75_vm13 = vcmp.eq.s32.totalorder %v55_v56, %v1557_v20  ;;  %v56_v4 = vadd.s32 96, %v1533_v1 }
  0x4b   :  { %1327 = vmatprep.subr.bf16.mxu0 %v1767_v10  ;;  %1231 = vmatprep.subr.bf16.mxu1 %v1777_v11  ;;  %v363_v57 = vsub.f32 %v361_v47, %v362_v61  ;;  %v875_v5 = vsel %vm75_vm13, 1.0, %v1482_v23  ;;  %v57_v44 = vadd.s32 104, %v1533_v1  ;;  %v58_v40 = vadd.s32 112, %v1533_v1 }
  0x4c   :  { %v1836_v32 = vpack.c.bf16 %v369_v13, %v362_v61  ;;  %vm76_vm14 = vcmp.eq.s32.totalorder %v56_v4, %v1557_v20  ;;  %v1848_v50 = vpack.c.bf16 %v1635_v49, %v1632_v48  ;;  %v59_v9 = vadd.s32 120, %v1533_v1 }
  0x4d   :  { %135 = vxpose.xlu0.b32.cont [8/16] (narrow) %v871_v35, 16  ;;  %v350_v35 = vand.u32 4294901760, %v349_v46  ;;  %v364_v37 = vand.u32 4294901760, %v363_v57  ;;  %v876_v33 = vsel %vm76_vm14, 1.0, %v1482_v23  ;;  %vm77_vm15 = vcmp.eq.s32.totalorder %v57_v44, %v1557_v20 }
  0x4e   :  { %v877_v62 = vsel %vm77_vm15, 1.0, %v1482_v23  ;;  %vm78_vm0 = vcmp.eq.s32.totalorder %v58_v40, %v1557_v20  ;;  %v1860_v55 = vpack.c.bf16 %v1688_v3, %v1683_v2  ;;  %vm79_vm1 = vcmp.eq.s32.totalorder %v59_v9, %v1557_v20 }
  0x4f   :  { %v1832_v19 = vpack.c.bf16 %v357_v12, %v350_v35  ;;  %v878_v46 = vsel %vm78_vm0, 1.0, %v1482_v23  ;;  %v879_v48 = vsel %vm79_vm1, 1.0, %v1482_v23  ;;  %v1866_v49 = vpack.c.bf16 %v1730_v31, %v1719_v22 }
  0x50   :  { %v1870_v1 = vpack.c.bf16 %v1758_v45, %v1753_v63  ;;  %v1878_v2 = vpack.c.bf16 %v368_v29, %v361_v47 }
  0x51   :  { %136 = vxpose.xlu0.b32.cont [9/16] (narrow) %v872_v36, 16  ;;  %v370_v36 = vsub.f32 %v368_v29, %v369_v13 }
  0x53   :  { %v371_v58 = vand.u32 4294901760, %v370_v36 }
  0x55   :  { %137 = vxpose.xlu0.b32.cont [10/16] (narrow) %v873_v0, 16  ;;  %v1841_v24 = vpack.c.bf16 %v371_v58, %v364_v37  ;;  %v1853_v0 = vpack.c.bf16 %v1653_v53, %v1642_v51  ;;  %v1874_v51 = vpack.c.bf16 %v1794_v15, %v1786_v14  ;;  %v1876_v53 = vpack.c.bf16 %v354_v39, %v347_v38 }
  0x59   :  { %138 = vxpose.xlu0.b32.cont [11/16] (narrow) %v874_v18, 16 }
  0x5d   :  { %139 = vxpose.xlu0.b32.cont [12/16] (narrow) %v875_v5, 16 }
  0x61   :  { %140 = vxpose.xlu0.b32.cont [13/16] (narrow) %v876_v33, 16 }
  0x65   :  { %141 = vxpose.xlu0.b32.cont [14/16] (narrow) %v877_v62, 16 }
  0x69   :  { %142 = vxpose.xlu0.b32.cont [15/16] (narrow) %v878_v46, 16 }
  0x6d   :  { %143 = vxpose.xlu0.b32.end [16/16] (narrow) %v879_v48, 16 }
  0xb1   :  { %v144_v20 = vpop.trf.xlu0 }
  0xb2   :  { %v241_v3 = vand.u32 4294901760, %v144_v20 }
  0xb4   :  { %v242_v23 = vsub.f32 %v144_v20, %v241_v3 }
  0xb5   :  { %v145_v56 = vpop.trf.xlu0 }
  0xb6   :  { %v1880_v35 = vand.u32 4294901760, %v145_v56  ;;  %v243_v22 = vand.u32 4294901760, %v242_v23 }
  0xb8   :  { %v1883_v31 = vsub.f32 %v145_v56, %v1880_v35  ;;  %1125 = vmatprep.mubr.f32.mxu0 %v243_v22  ;;  %v244_v63 = vsub.f32 %v242_v23, %v243_v22 }
  0xba   :  { %v245_v45 = vand.u32 4294901760, %v244_v63  ;;  %v253_v14 = vand.u32 4294901760, %v1883_v31 }
  0xbc   :  { %1020 = vmatprep.mubr.f32.mxu1 %v245_v45  ;;  %1126 = vmatmul.mubr.f32.vlgmr.msra.gmra.mrb[0].mxu0 %v253_v14  ;;  %v254_v15 = vsub.f32 %v1883_v31, %v253_v14 }
  0xbd   :  { %1329 = vmatpush3.bf16.msra.mxu0 %v1767_v10  ;;  %1160 = vmatprep.mubr.f32.mxu0 %v241_v3 }
  0xbe   :  { %1331 = vmatprep.subr.bf16.mxu0 %v1693_v6  ;;  %v255_v38 = vand.u32 4294901760, %v254_v15 }
  0xc0   :  { %1021 = vmatmul.mubr.f32.vlgmr.msra.gmra.mrb[0].mxu1 %v255_v38 }
  0xc1   :  { %1233 = vmatpush3.bf16.msra.mxu1 %v1777_v11  ;;  %1333 = vmatpush3.bf16.msra.mxu0 %v1693_v6 }
  0xc2   :  { %1055 = vmatprep.mubr.f32.mxu1 %v241_v3  ;;  %1235 = vmatprep.subr.bf16.mxu1 %v1725_v30 }
  0xc3   :  { %1335 = vmatprep.subr.bf16.mxu0 %v1712_v16 }
  0xc5   :  { %1237 = vmatpush3.bf16.msra.mxu1 %v1725_v30  ;;  %1337 = vmatpush3.bf16.msra.mxu0 %v1712_v16 }
  0xc6   :  { %1239 = vmatprep.subr.bf16.mxu1 %v1747_v59  ;;  %1339 = vmatprep.subr.bf16.mxu0 %v1762_v7 }
  0xc9   :  { %1241 = vmatpush3.bf16.msra.mxu1 %v1747_v59  ;;  %1341 = vmatpush3.bf16.msra.mxu0 %v1762_v7 }
  0xca   :  { %1243 = vmatprep.subr.bf16.mxu1 %v1789_v52  ;;  %1343 = vmatprep.subr.bf16.mxu0 %v1779_v60 }
  0xcd   :  { %1245 = vmatpush3.bf16.msra.mxu1 %v1789_v52  ;;  %1345 = vmatpush3.bf16.msra.mxu0 %v1779_v60 }
  0xce   :  { %1247 = vmatprep.subr.bf16.mxu1 %v1805_v43  ;;  %1347 = vmatprep.subr.bf16.mxu0 %v1815_v27 }
  0xd1   :  { %1249 = vmatpush3.bf16.msra.mxu1 %v1805_v43  ;;  %1349 = vmatpush3.bf16.msra.mxu0 %v1815_v27 }
  0xd2   :  { %1251 = vmatprep.subr.bf16.mxu1 %v1826_v34  ;;  %1351 = vmatprep.subr.bf16.mxu0 %v1819_v28 }
  0xd5   :  { %1253 = vmatpush3.bf16.msra.mxu1 %v1826_v34  ;;  %1353 = vmatpush3.bf16.msra.mxu0 %v1819_v28 }
  0xd6   :  { %1255 = vmatprep.subr.bf16.mxu1 %v1832_v19  ;;  %1355 = vmatprep.subr.bf16.mxu0 %v1836_v32 }
  0xd9   :  { %1257 = vmatpush3.bf16.msra.mxu1 %v1832_v19  ;;  %1357 = vmatpush3.bf16.msra.mxu0 %v1836_v32 }
  0xda   :  { %1259 = vmatprep.subr.bf16.mxu1 %v1841_v24  ;;  %1359 = vmatprep.subr.bf16.mxu0 %v1553_v17 }
  0xdc   :  { %1161 = vmatmul.mubr.f32.vlgmr.msra.gmra.mrb[0].mxu0 %v1880_v35 }
  0xdd   :  { %1261 = vmatpush3.bf16.msra.mxu1 %v1841_v24  ;;  %1361 = vmatpush3.bf16.msra.mxu0 %v1553_v17 }
  0xde   :  { %1195 = vmatprep.mubr.f32.mxu0 %v241_v3  ;;  %1263 = vmatprep.subr.bf16.mxu1 %v1848_v50 }
  0xdf   :  { %1363 = vmatprep.subr.bf16.mxu0 %v1561_v21 }
  0xe0   :  { %1056 = vmatmul.mubr.f32.vlgmr.msra.gmra.mrb[0].mxu1 %v1880_v35 }
  0xe1   :  { %1265 = vmatpush3.bf16.msra.mxu1 %v1848_v50  ;;  %1090 = vmatprep.mubr.f32.mxu1 %v242_v23 }
  0xe2   :  { %1365 = vmatpush3.bf16.msra.mxu0 %v1561_v21  ;;  %1267 = vmatprep.subr.bf16.mxu1 %v1853_v0 }
  0xe3   :  { %1367 = vmatprep.subr.bf16.mxu0 %v1577_v25 }
  0xe5   :  { %1269 = vmatpush3.bf16.msra.mxu1 %v1853_v0 }
  0xe6   :  { %1369 = vmatpush3.bf16.msra.mxu0 %v1577_v25  ;;  %1271 = vmatprep.subr.bf16.mxu1 %v1860_v55 }
  0xe7   :  { %1371 = vmatprep.subr.bf16.mxu0 %v1612_v41 }
  0xe9   :  { %1273 = vmatpush3.bf16.msra.mxu1 %v1860_v55 }
  0xea   :  { %1373 = vmatpush3.bf16.msra.mxu0 %v1612_v41  ;;  %1275 = vmatprep.subr.bf16.mxu1 %v1866_v49 }
  0xeb   :  { %1375 = vmatprep.subr.bf16.mxu0 %v1619_v42 }
  0xed   :  { %1277 = vmatpush3.bf16.msra.mxu1 %v1866_v49 }
  0xee   :  { %1377 = vmatpush3.bf16.msra.mxu0 %v1619_v42  ;;  %1279 = vmatprep.subr.bf16.mxu1 %v1870_v1 }
  0xef   :  { %1379 = vmatprep.subr.bf16.mxu0 %v1661_v54 }
  0xf1   :  { %1281 = vmatpush3.bf16.msra.mxu1 %v1870_v1 }
  0xf2   :  { %1381 = vmatpush3.bf16.msra.mxu0 %v1661_v54  ;;  %1283 = vmatprep.subr.bf16.mxu1 %v1874_v51 }
  0xf3   :  { %1383 = vmatprep.subr.bf16.mxu0 %v1702_v8 }
  0xf5   :  { %1285 = vmatpush3.bf16.msra.mxu1 %v1874_v51 }
  0xf6   :  { %1385 = vmatpush3.bf16.msra.mxu0 %v1702_v8  ;;  %1287 = vmatprep.subr.bf16.mxu1 %v1876_v53 }
  0xf7   :  { %1387 = vmatprep.subr.bf16.mxu0 %v1738_v26 }
  0xf9   :  { %1289 = vmatpush3.bf16.msra.mxu1 %v1876_v53 }
  0xfa   :  { %1389 = vmatpush3.bf16.msra.mxu0 %v1738_v26  ;;  %1291 = vmatprep.subr.bf16.mxu1 %v1878_v2 }
  0xfd   :  { %1196 = vmatmul.mubr.f32.vlgmr.msra.gmra.mrb[0].mxu0 %v1880_v35  ;;  %1293 = vmatpush3.bf16.msra.mxu1 %v1878_v2 }
 0x100   :  { %1091 = vmatmul.mubr.f32.vlgmr.msra.gmra.mrb[0].mxu1 %v1883_v31 }
 0x1d0   :  { %v1197_v17 = vpop.f32.mrb[0].mxu0 }
 0x1d1   :  { %v834_v21 = vpop.f32.mrb[1].mxu0 }
 0x1d3   :  { %v1092_v25 = vpop.f32.mrb[0].mxu1 }
 0x1d4   :  { %v1390_v41 = vadd.f32 %v1197_v17, %v1092_v25  ;;  %v518_v42 = vpop.f32.mrb[1].mxu1 }
 0x1d5   :  { %v1391_v54 = vadd.f32 %v834_v21, %v518_v42 }
 0x1d6   :  { %845 = vst [vmem:[#allocation7 + $0x8] sm:$0xff] %v1390_v41 }
 0x1d7   :  { %844 = vst [vmem:[#allocation7] sm:$0xff] %v1391_v54 }
 0x1d8   :  { %1461 = shalt.err (!%p1458_p6)
}
 0x1d9   :  { %s1462_s11 = scalar_lea.hbm %s1970_s2, 256 }
 0x1da   :  { %p1463_p7 = scmp.ne.s32.totalorder %s1970_s2, %s1462_s11  ;;  %p1466_p8 = scmp.lt.u32.totalorder %s1462_s11, %s1970_s2 }
 0x1dc   :  { %p1468_p9 = pnand %p1466_p8, %p1463_p7 }
 0x1de   :  { %1471 = shalt.err (!%p1468_p9)
}
 0x1df   :  { %857 = dma.vmem_to_hbm [thread:$0]  %s852_s7, 256, %s1970_s2, [#allocation4], %s1480_s0, %s1480_s0, %s1481_s4  }
 0x1e0   :  { %1476 = dma.done.wait [#allocation4], 256  }
 0x1e1   :  { %1477 = vsyncadd [#allocation4], 4294967040 }
 0x1e2   :  { %861 = vsyncpa [#allocation3], 1 }
 0x1e3   :  { %862 = vsyncpa [#allocation6], 1 }
 0x1e4   :  { %863 = vsyncpa [#allocation4], 1 }

</bundles_post_ra>
